<compile_context>
chip_gen: v7x
topology: tpu7x:2x2x1
jax: 0.10.0
libtpu: 0.0.40
codegen_flags: <defaults>
</compile_context>

<pallas_src>
import jax
import jax.numpy as jnp
from jax.experimental import pallas as pl
from jax.experimental.pallas import tpu as pltpu


_VMEM_LIMIT_BYTES = 32 << 20     # safe on v5e/v6e (128 MiB phys) and v7x (64 MiB phys)
_RESCALE_BLOCK_BYTES = 4 << 20   # per-block budget for the two-pass rescale
_FUSED_VMEM_BUDGET = 24 << 20    # 4x slab (double-buffered in+out) + weights must fit


# --------------------------------------------------------------------------- #
# Kernels
# --------------------------------------------------------------------------- #
def _fused_se_kernel(x_ref, w1t_ref, b1_ref, w2_ref, b2_ref, o_ref):
    # x_ref:  (C, HW)      one batch's channels-first slab
    # w1t_ref:(C, C_red)   fc1.weight transposed
    # b1_ref: (1, C_red)
    # w2_ref: (C, C_red)   fc2.weight (PyTorch layout)
    # b2_ref: (C, 1)
    # o_ref:  (C, HW)
    x = x_ref[...].astype(jnp.float32)

    # squeeze: mean over HW (lane-axis reduce) -> channel column
    s_col = jnp.mean(x, axis=1, keepdims=True)                                 # (C, 1)

    # fc1 + relu: contract over C (sublane-axis reduce) -> row over C_red
    h_row = jnp.sum(w1t_ref[...] * s_col, axis=0, keepdims=True) + b1_ref[...]  # (1, C_red)
    h_row = jnp.maximum(h_row, 0.0)

    # fc2 + sigmoid: contract over C_red (lane-axis reduce) -> channel column
    z_col = jnp.sum(w2_ref[...] * h_row, axis=1, keepdims=True) + b2_ref[...]   # (C, 1)
    z_col = jax.nn.sigmoid(z_col)

    # excite: per-channel rescale
    o_ref[...] = (x * z_col).astype(o_ref.dtype)


def _rescale_kernel(z_ref, x_ref, o_ref):
    # z_ref: (C, 1) f32 per-batch channel scales;  x_ref/o_ref: (C, TILE_HW)
    # Multiply in f32 and cast on store (safe for bf16 I/O even on v5e).
    o_ref[...] = (x_ref[...].astype(jnp.float32) * z_ref[...]).astype(o_ref.dtype)


# --------------------------------------------------------------------------- #
# Tiling helper for the two-pass rescale
# --------------------------------------------------------------------------- #
def _pick_tile_hw(B, C, HW, itemsize,
                  target_block_bytes=_RESCALE_BLOCK_BYTES, max_lanes=32768):
    """Spatial tile for the rescale kernel: VMEM-budget-driven, lane-dense."""
    if C * HW * itemsize <= target_block_bytes:
        tile_hw = HW                       # full extent: no ragged tiles, fewest steps
    else:
        lanes_budget = max(128, (target_block_bytes // (C * itemsize)) // 128 * 128)
        tile_hw = int(min(lanes_budget, max_lanes))
        if tile_hw >= HW:
            tile_hw = HW
    # Guarantee >= 2 total grid points so the v7x megacore can split the work
    # even at batch size 1 (split HW in two although one block would fit).
    if B * pl.cdiv(HW, tile_hw) < 2 and HW > 128:
        tile_hw = int(max(128, pl.cdiv(pl.cdiv(HW, 2), 128) * 128))
    return int(tile_hw)


# --------------------------------------------------------------------------- #
# Forward pass
# --------------------------------------------------------------------------- #
def channel_se_layer(x, w1, b1, w2, b2):
    """Squeeze-and-Excitation forward.

    x:  (B, C, H, W)
    w1: (C_red, C)  = fc1.weight (PyTorch out-by-in layout)
    b1: (C_red,)    = fc1.bias
    w2: (C, C_red)  = fc2.weight
    b2: (C,)        = fc2.bias
    """
    B, C, H, W = x.shape
    C_red = w1.shape[0]
    HW = H * W
    itemsize = jnp.dtype(x.dtype).itemsize
    x3 = x.reshape(B, C, HW)

    slab_bytes = C * HW * itemsize
    fused_ok = (B >= 2) and (4 * slab_bytes + (1 << 20) <= _FUSED_VMEM_BUDGET)

    if fused_ok:
        # -------- fused single-pass: squeeze + excite + rescale in one kernel ----
        w1t = w1.astype(jnp.float32).T                  # (C, C_red)
        b1r = b1.astype(jnp.float32).reshape(1, C_red)  # (1, C_red)
        w2f = w2.astype(jnp.float32)                    # (C, C_red)
        b2c = b2.astype(jnp.float32).reshape(C, 1)      # (C, 1)

        cost = pl.CostEstimate(
            flops=3 * B * C * HW + 4 * B * C * C_red,
            transcendentals=B * C,
            bytes_accessed=2 * B * C * HW * itemsize + 4 * (2 * C * C_red + C + C_red),
        )
        out3 = pl.pallas_call(
            _fused_se_kernel,
            out_shape=jax.ShapeDtypeStruct((B, C, HW), x.dtype),
            grid_spec=pltpu.PrefetchScalarGridSpec(
                num_scalar_prefetch=0,
                grid=(B,),
                in_specs=[
                    pl.BlockSpec((None, C, HW), lambda b: (b, 0, 0)),   # x slab (batch squeezed)
                    pl.BlockSpec((C, C_red), lambda b: (0, 0)),         # w1^T
                    pl.BlockSpec((1, C_red), lambda b: (0, 0)),         # b1
                    pl.BlockSpec((C, C_red), lambda b: (0, 0)),         # w2
                    pl.BlockSpec((C, 1), lambda b: (0, 0)),             # b2
                ],
                out_specs=pl.BlockSpec((None, C, HW), lambda b: (b, 0, 0)),
            ),
            compiler_params=pltpu.CompilerParams(
                dimension_semantics=("parallel",),
                vmem_limit_bytes=_VMEM_LIMIT_BYTES,
            ),
            cost_estimate=cost,
        )(x3, w1t, b1r, w2f, b2c)
        return out3.reshape(B, C, H, W)

    # -------- two-pass fallback: XLA excitation + Pallas rescale -------------
    s = jnp.mean(x3.astype(jnp.float32), axis=2)                               # (B, C)
    h = jnp.maximum(
        jnp.dot(s, w1.astype(jnp.float32).T, preferred_element_type=jnp.float32) + b1, 0.0)
    z = jax.nn.sigmoid(
        jnp.dot(h, w2.astype(jnp.float32).T, preferred_element_type=jnp.float32) + b2)
    z = z.reshape(B, C, 1).astype(jnp.float32)                                 # (B, C, 1)

    tile_hw = _pick_tile_hw(B, C, HW, itemsize)
    n_t = pl.cdiv(HW, tile_hw)

    cost = pl.CostEstimate(
        flops=B * C * HW,
        transcendentals=0,
        bytes_accessed=(2 * B * C * HW + B * C) * itemsize,
    )
    out3 = pl.pallas_call(
        _rescale_kernel,
        out_shape=jax.ShapeDtypeStruct((B, C, HW), x.dtype),
        grid_spec=pltpu.PrefetchScalarGridSpec(
            num_scalar_prefetch=0,
            grid=(B, n_t),
            in_specs=[
                pl.BlockSpec((None, C, 1), lambda b, t: (b, 0, 0)),         # z scales
                pl.BlockSpec((None, C, tile_hw), lambda b, t: (b, 0, t)),   # x tile
            ],
            out_specs=pl.BlockSpec((None, C, tile_hw), lambda b, t: (b, 0, t)),
        ),
        compiler_params=pltpu.CompilerParams(
            dimension_semantics=("parallel", "parallel"),
            vmem_limit_bytes=_VMEM_LIMIT_BYTES,
        ),
        cost_estimate=cost,
    )(z, x3)
    return out3.reshape(B, C, H, W)


# --------------------------------------------------------------------------- #
# Pure-JAX reference (mirrors the PyTorch module)
# --------------------------------------------------------------------------- #
def _reference(x, w1, b1, w2, b2):
    B, C, H, W = x.shape
    s = x.reshape(B, C, -1).mean(axis=2)
    h = jnp.maximum(s @ w1.T + b1, 0.0)
    z = jax.nn.sigmoid(h @ w2.T + b2)
    return x * z.reshape(B, C, 1, 1)


if __name__ == "__main__":
    key = jax.random.PRNGKey(0)
    jitted = jax.jit(channel_se_layer)

    # ---- Test 1: fused single-pass path (B >= 2, slab fits VMEM) ----
    B, C, H, W = 2, 4, 16, 16
    reduction_ratio = 2
    C_red = C // reduction_ratio

    kx, k1, k2, k3, k4, key = jax.random.split(key, 6)
    x = jax.random.normal(kx, (B, C, H, W), dtype=jnp.float32)
    w1 = jax.random.normal(k1, (C_red, C), dtype=jnp.float32) * 0.1   # fc1.weight
    b1 = jax.random.normal(k2, (C_red,), dtype=jnp.float32) * 0.1
    w2 = jax.random.normal(k3, (C, C_red), dtype=jnp.float32) * 0.1   # fc2.weight
    b2 = jax.random.normal(k4, (C,), dtype=jnp.float32) * 0.1

    out = jax.block_until_ready(jitted(x, w1, b1, w2, b2))
    ref = _reference(x, w1, b1, w2, b2)
    assert out.shape == (B, C, H, W)
    assert jnp.allclose(out, ref, atol=1e-5, rtol=1e-5), "fused path mismatch vs reference"

    # ---- Test 2: two-pass path (B == 1, non-multiple-of-128 HW -> ragged tile) ----
    B2, C2, H2, W2 = 1, 8, 20, 20
    C2_red = C2 // reduction_ratio
    kx, k1, k2, k3, k4, key = jax.random.split(key, 6)
    x2 = jax.random.normal(kx, (B2, C2, H2, W2), dtype=jnp.float32)
    w1b = jax.random.normal(k1, (C2_red, C2), dtype=jnp.float32) * 0.1
    b1b = jax.random.normal(k2, (C2_red,), dtype=jnp.float32) * 0.1
    w2b = jax.random.normal(k3, (C2, C2_red), dtype=jnp.float32) * 0.1
    b2b = jax.random.normal(k4, (C2,), dtype=jnp.float32) * 0.1

    out2 = jax.block_until_ready(jax.jit(channel_se_layer)(x2, w1b, b1b, w2b, b2b))
    ref2 = _reference(x2, w1b, b1b, w2b, b2b)
    assert out2.shape == (B2, C2, H2, W2)
    assert jnp.allclose(out2, ref2, atol=1e-5, rtol=1e-5), "two-pass path mismatch vs reference"

    print("KERNEL_OK")
</pallas_src>

<mosaic_0001>
module attributes {stable_mosaic.version = 11 : i64} {
  func.func @_fused_se_kernel(%arg0: i32, %arg1: memref<1x4x256xf32, #tpu.memory_space<vmem>>, %arg2: memref<4x2xf32, #tpu.memory_space<vmem>>, %arg3: memref<1x2xf32, #tpu.memory_space<vmem>>, %arg4: memref<4x2xf32, #tpu.memory_space<vmem>>, %arg5: memref<4x1xf32, #tpu.memory_space<vmem>>, %arg6: memref<1x4x256xf32, #tpu.memory_space<vmem>>) attributes {dimension_semantics = [#tpu.dimension_semantics<parallel>], iteration_bounds = array<i64: 2>, scalar_prefetch = 0 : i64, scratch_operands = 0 : i64, tpu.core_type = #tpu.core_type<tc>, window_params = [{transform_indices = @transform_0, window_bounds = array<i64: 1, 4, 256>}, {pipeline_mode = #tpu.pipeline_mode<synchronous>, transform_indices = @transform_1, window_bounds = array<i64: 4, 2>}, {pipeline_mode = #tpu.pipeline_mode<synchronous>, transform_indices = @transform_2, window_bounds = array<i64: 1, 2>}, {pipeline_mode = #tpu.pipeline_mode<synchronous>, transform_indices = @transform_3, window_bounds = array<i64: 4, 2>}, {pipeline_mode = #tpu.pipeline_mode<synchronous>, transform_indices = @transform_4, window_bounds = array<i64: 4, 1>}, {transform_indices = @transform_5, window_bounds = array<i64: 1, 4, 256>}]} {
    %c0 = arith.constant 0 : index
    %c0_0 = arith.constant 0 : index
    %c0_1 = arith.constant 0 : index
    %0 = vector.load %arg1[%c0, %c0_0, %c0_1] : memref<1x4x256xf32, #tpu.memory_space<vmem>>, vector<1x4x256xf32>
    %1 = vector.shape_cast %0 : vector<1x4x256xf32> to vector<4x256xf32>
    %cst = arith.constant dense<0.000000e+00> : vector<4xf32>
    %2 = vector.multi_reduction <add>, %1, %cst [1] : vector<4x256xf32> to vector<4xf32>
    %3 = vector.shape_cast %2 : vector<4xf32> to vector<4x1xf32>
    %cst_2 = arith.constant 2.560000e+02 : f32
    %4 = vector.broadcast %cst_2 : f32 to vector<4x1xf32>
    %5 = arith.divf %3, %4 : vector<4x1xf32>
    %c0_3 = arith.constant 0 : index
    %c0_4 = arith.constant 0 : index
    %6 = vector.load %arg2[%c0_3, %c0_4] : memref<4x2xf32, #tpu.memory_space<vmem>>, vector<4x2xf32>
    %7 = vector.broadcast %5 : vector<4x1xf32> to vector<4x2xf32>
    %8 = arith.mulf %6, %7 : vector<4x2xf32>
    %cst_5 = arith.constant dense<0.000000e+00> : vector<2xf32>
    %9 = vector.multi_reduction <add>, %8, %cst_5 [0] : vector<4x2xf32> to vector<2xf32>
    %10 = vector.shape_cast %9 : vector<2xf32> to vector<1x2xf32>
    %c0_6 = arith.constant 0 : index
    %c0_7 = arith.constant 0 : index
    %11 = vector.load %arg3[%c0_6, %c0_7] : memref<1x2xf32, #tpu.memory_space<vmem>>, vector<1x2xf32>
    %12 = arith.addf %10, %11 : vector<1x2xf32>
    %cst_8 = arith.constant 0.000000e+00 : f32
    %13 = vector.broadcast %cst_8 : f32 to vector<1x2xf32>
    %14 = arith.maximumf %12, %13 : vector<1x2xf32>
    %c0_9 = arith.constant 0 : index
    %c0_10 = arith.constant 0 : index
    %15 = vector.load %arg4[%c0_9, %c0_10] : memref<4x2xf32, #tpu.memory_space<vmem>>, vector<4x2xf32>
    %16 = vector.broadcast %14 : vector<1x2xf32> to vector<4x2xf32>
    %17 = arith.mulf %15, %16 : vector<4x2xf32>
    %cst_11 = arith.constant dense<0.000000e+00> : vector<4xf32>
    %18 = vector.multi_reduction <add>, %17, %cst_11 [1] : vector<4x2xf32> to vector<4xf32>
    %19 = vector.shape_cast %18 : vector<4xf32> to vector<4x1xf32>
    %c0_12 = arith.constant 0 : index
    %c0_13 = arith.constant 0 : index
    %20 = vector.load %arg5[%c0_12, %c0_13] : memref<4x1xf32, #tpu.memory_space<vmem>>, vector<4x1xf32>
    %21 = arith.addf %19, %20 : vector<4x1xf32>
    %22 = arith.negf %21 : vector<4x1xf32>
    %23 = math.exp %22 : vector<4x1xf32>
    %cst_14 = arith.constant 1.000000e+00 : f32
    %24 = vector.broadcast %cst_14 : f32 to vector<4x1xf32>
    %25 = arith.addf %24, %23 : vector<4x1xf32>
    %26 = arith.divf %24, %25 : vector<4x1xf32>
    %27 = vector.broadcast %26 : vector<4x1xf32> to vector<4x256xf32>
    %28 = arith.mulf %1, %27 : vector<4x256xf32>
    %c0_15 = arith.constant 0 : index
    %c0_16 = arith.constant 0 : index
    %c0_17 = arith.constant 0 : index
    %29 = vector.load %arg6[%c0_15, %c0_16, %c0_17] : memref<1x4x256xf32, #tpu.memory_space<vmem>>, vector<1x4x256xf32>
    %30 = vector.shape_cast %29 : vector<1x4x256xf32> to vector<4x256xf32>
    %31 = vector.shape_cast %28 : vector<4x256xf32> to vector<1x4x256xf32>
    tpu.vector_store %arg6[%c0_15, %c0_16, %c0_17], %31 {strides = array<i32>} : memref<1x4x256xf32, #tpu.memory_space<vmem>>, vector<1x4x256xf32>,
    return
  }
  func.func @transform_0(%arg0: i32) -> (i32, i32, i32) {
    %c0_i32 = arith.constant 0 : i32
    %c0_i32_0 = arith.constant 0 : i32
    %c0_i32_1 = arith.constant 0 : i32
    return %arg0, %c0_i32, %c0_i32_0 : i32, i32, i32
  }
  func.func @transform_1(%arg0: i32) -> (i32, i32) {
    %c0_i32 = arith.constant 0 : i32
    %c0_i32_0 = arith.constant 0 : i32
    %c0_i32_1 = arith.constant 0 : i32
    return %c0_i32, %c0_i32_0 : i32, i32
  }
  func.func @transform_2(%arg0: i32) -> (i32, i32) {
    %c0_i32 = arith.constant 0 : i32
    %c0_i32_0 = arith.constant 0 : i32
    %c0_i32_1 = arith.constant 0 : i32
    return %c0_i32, %c0_i32_0 : i32, i32
  }
  func.func @transform_3(%arg0: i32) -> (i32, i32) {
    %c0_i32 = arith.constant 0 : i32
    %c0_i32_0 = arith.constant 0 : i32
    %c0_i32_1 = arith.constant 0 : i32
    return %c0_i32, %c0_i32_0 : i32, i32
  }
  func.func @transform_4(%arg0: i32) -> (i32, i32) {
    %c0_i32 = arith.constant 0 : i32
    %c0_i32_0 = arith.constant 0 : i32
    %c0_i32_1 = arith.constant 0 : i32
    return %c0_i32, %c0_i32_0 : i32, i32
  }
  func.func @transform_5(%arg0: i32) -> (i32, i32, i32) {
    %c0_i32 = arith.constant 0 : i32
    %c0_i32_0 = arith.constant 0 : i32
    %c0_i32_1 = arith.constant 0 : i32
    return %arg0, %c0_i32, %c0_i32_0 : i32, i32, i32
  }
}

</mosaic_0001>

<bundles_post_ra>
// kernel: channel_se_layer.1
= control target key start
LH: loop header
LB: loop body
LE: loop exit
PB: predicated region body
PF: predicated region fallthrough
CT: control target
= control target key end

     0   :  { %s407_s18 = smov 0   ;;  %s445_s0 = inlined_call_operand.vmem [shape: f32[2,4,256], index: 0, kind: input, shape index: {}]   ;;  %s446_s1 = inlined_call_operand.vmem [shape: f32[4,2], index: 1, kind: input, shape index: {}]   ;;  %s447_s2 = inlined_call_operand.vmem [shape: f32[1,2], index: 2, kind: input, shape index: {}]   ;;  %s448_s3 = inlined_call_operand.vmem [shape: f32[4,2], index: 3, kind: input, shape index: {}]   ;;  %s449_s4 = inlined_call_operand.vmem [shape: f32[4,1], index: 4, kind: input, shape index: {}]   ;;  %s450_s5 = inlined_call_operand.vmem [shape: f32[2,4,256], index: 5, kind: output, shape index: {}]  }
   0x1 LB: > { %s336_s19 = sadd.s32 4294967295, %s373_s18   ;;  %p340_p0 = scmp.ge.s32.totalorder %s373_s18, 1  ;;  %s373_s18 = sphi %s407_s18, %s15_s18  }
   0x2   : > { %p187_p1 = scmp.lt.s32.totalorder %s373_s18, 3 }
   0x4   : > { %p188_p2 = pnand %p340_p0, %p187_p1 }
   0x5   : > { %p215_p3 = scmp.lt.s32.totalorder (!%p188_p2), %s336_s19, 1  ;;  %vm229_vm0 = vcmask (!%p188_p2), 1043456   ;;  %v237_v5 = vld [vmem:[%s446_s1] sm:$0xf] (!%p188_p2)  ;;  %vm239_vm1 = vcmask (!%p188_p2), 11264   ;;  %v251_v13 = vlaneseq (!%p188_p2)  ;;  %v375_v26 = vmov (!%p188_p2), 0  }
   0x6   : > { %191 = sbr.rel (%p188_p2) target bundleno = 493 (0x1ed), region = 40  ;;  %v247_v17 = vld [vmem:[%s447_s2] sm:$0x1] (!%p188_p2)  ;;  %360 = vset.pattern.permute.xlu1 (!%p188_p2), %v375_v26  ;;  %361 = vset.pattern.permute.xlu0 (!%p188_p2), %v375_v26  ;;  %v376_v34 = vmov (!%p188_p2), 839922192  }
   0x7   : > { %v252_v16 = vshrl.u32 (!%p188_p2), %v251_v13, 7  ;;  %v250_v22 = vld [vmem:[%s448_s3] sm:$0xf] (!%p188_p2)  ;;  %v272_v35 = vunpack.c.l.s4 (!%p188_p2), %v376_v34 }
   0x8   : > { %v259_v27 = vld [vmem:[%s449_s4] sm:$0xf] (!%p188_p2) }
   0x9   : > { %v253_v20 = vsub.s32 (!%p188_p2), 0, %v252_v16  ;;  %v273_v36 = vunpack.c.0.s8 (!%p188_p2), %v272_v35 }
   0xb   : > { %v276_v37 = vsub.s32 (!%p188_p2), %v273_v36, %v252_v16 }
   0xd   : > { %s452_s19 = smov (!%p215_p3, %s336_s19), 1 }
   0xe   : > { %s348_s20 = sshll.u32 %s452_s19, 3 }
   0xf   : > { %s219_s23 = scalar_lea.vmem %s445_s0, %s348_s20  ;;  %s224_s9 = scalar_lea.vmem %s450_s5, %s348_s20 }
  0x10   : > { %v225_v0 = vld [vmem:[%s219_s23] sm:$0xff] }
  0x11   : > { %v227_v1 = vcombine.high %v225_v0, %v225_v0  ;;  %v230_v2 = vsel %vm229_vm0, %v225_v0, 0.0 }
  0x13   : > { %v231_v3 = vsel %vm229_vm0, %v227_v1, 0.0 }
  0x14   : > { %v232_v4 = vadd.f32 %v231_v3, %v230_v2 }
  0x16   : > { %233 = vadd.xlane.f32.xlu0 %v232_v4 }
  0xa3   : > { %v234_v6 = vpop.xlane.xlu0 %233 }
  0xa4   : > { %v236_v7 = vmul.f32 0.00390625, %v234_v6 }
  0xa6   : > { %v238_v8 = vmul.f32 %v237_v5, %v236_v7 }
  0xa8   : > { %v240_v9 = vsel %vm239_vm1, %v238_v8, 0.0 }
  0xa9   : > { %v241_v10 = vrot.slane %v240_v9, 4 }
  0xab   : > { %v242_v11 = vadd.f32 %v241_v10, %v240_v9 }
  0xad   : > { %v243_v12 = vrot.slane %v242_v11, 2 }
  0xaf   : > { %v244_v14 = vadd.f32 %v243_v12, %v242_v11 }
  0xb1   : > { %v245_v15 = vrot.slane %v244_v14, 1 }
  0xb3   : > { %v246_v18 = vadd.f32 %v245_v15, %v244_v14 }
  0xb5   : > { %v248_v19 = vadd.f32 %v247_v17, %v246_v18 }
  0xb7   : > { %v249_v21 = vmax.f32 %v248_v19, 0.0 }
  0xb9   : > { %v254_v23 = vrot.slane %v249_v21, %v253_v20 }
  0xbb   : > { %v255_v24 = vmul.f32 %v254_v23, %v250_v22 }
  0xbd   : > { %v256_v25 = vsel %vm239_vm1, %v255_v24, 0.0 }
  0xbe   : > { %257 = vadd.xlane.f32.xlu0 %v256_v25 }
 0x14b   : > { %v258_v28 = vpop.xlane.xlu0 %257 }
 0x14c   : > { %v260_v29 = vadd.f32 %v259_v27, %v258_v28 }
 0x14e   : > { %v345_v30 = vmul.f32 -1.442695, %v260_v29 }
 0x150   : > { %363 = vpow2.f32 %v345_v30 }
 0x15a   : > { %v364_v31 = vpop.eup %363 }
 0x15b   : > { %v264_v32 = vadd.f32 1.0, %v364_v31 }
 0x15d   : > { %365 = vrcp.f32 %v264_v32 }
 0x167   : > { %v366_v33 = vpop.eup %365 }
 0x168   : > { %269 = vperm.xlu1 %360, %v366_v33  }
 0x1e7   : > { %v270_v38 = vpop.permute.xlu1 %269 }
 0x1e8   : > { %v277_v39 = vrot.slane %v270_v38, %v276_v37 }
 0x1ea   : > { %v279_v40 = vmul.f32 %v277_v39, %v225_v0 }
 0x1ec   : > { %280 = vst [vmem:[%s224_s9] sm:$0xff] %v279_v40 }
 0x1ed PF: > { %s15_s18 = sadd.s32 1, %s373_s18  }
 0x1ee   : > { %p12_p4 = scmp.ge.s32.totalorder %s15_s18, 4  }
 0x1f0   :  { %14 = sbr.rel (!%p12_p4) target bundleno = 1 (0x1), region = 70 }

</bundles_post_ra>
